<compile_context>
chip_gen: v6e
topology: v6e:2x2x1
jax: 0.10.0
libtpu: 0.0.40
codegen_flags: <defaults>
</compile_context>

<pallas_src>
import functools

import jax
import jax.numpy as jnp
from jax.experimental import pallas as pl
from jax.experimental.pallas import tpu as pltpu

LATENT_DIM = 1
LANE = 128
SUBLANE = 8


def _round_up(n, m):
    return ((n + m - 1) // m) * m


def _pad_to(a, shape):
    return jnp.pad(a, [(0, s - d) for d, s in zip(a.shape, shape)])


def _vae_kernel(scal_ref, xa_ref, we1_ref, rows_ref, wd2_ref, out_ref, *, h_p, d_out):
    """One batch tile of the VAE forward pass.

    scal_ref : SMEM f32[5]   [be2, wmu, bmu, wls, bls] (the 1x1 latent heads)
    xa_ref   : (tb, 1+d_in)  column 0 = eps, columns 1.. = x
    we1_ref  : (1+d_in, h_p) row 0 is zero, so the eps column is a no-op in the matmul
    rows_ref : (8, cols)     rows 0..4 = be1, we2 (as a row), wd1, bd1, bd2
    wd2_ref  : (h_p, d_out)  contraction axis padded, output axis left unpadded
    out_ref  : (tb, d_out)
    """
    xa = xa_ref[...]

    be1 = rows_ref[0:1, :h_p]
    we2 = rows_ref[1:2, :h_p]
    wd1 = rows_ref[2:3, :h_p]
    bd1 = rows_ref[3:4, :h_p]
    bd2 = rows_ref[4:5, :d_out]

    # ---- encoder: Linear(d_in, H) -> ReLU -> Linear(H, 1) ----
    h = jnp.dot(xa, we1_ref[...], preferred_element_type=jnp.float32) + be1
    h = jnp.maximum(h, 0.0)
    # N=1 "matmul" as VPU multiply + XLU cross-lane reduce (not an MXU pass).
    h_enc = jnp.sum(h * we2, axis=-1, keepdims=True) + scal_ref[0]

    # ---- _sample_latent: 1x1 Linear heads are scalar affines (SMEM scalars) ----
    mu = h_enc * scal_ref[1] + scal_ref[2]
    log_sigma = h_enc * scal_ref[3] + scal_ref[4]
    eps = xa[:, 0:1]                                   # lane-0 column = noise
    z = jnp.exp(log_sigma) * eps + mu                  # EUP exp + fused VPU math

    # ---- decoder: Linear(1, H) -> ReLU -> Linear(H, d_out) ----
    d = jnp.maximum(z * wd1 + bd1, 0.0)                # K=1 matmul as VPU outer product
    out = jnp.dot(d, wd2_ref[...], preferred_element_type=jnp.float32) + bd2
    out_ref[...] = out.astype(out_ref.dtype)


def prepare_params(params):
    """One-time padding/packing of the VAE parameters (hoisted out of the hot path)."""
    d_in, hidden = params["we1"].shape
    d_out = params["wd2"].shape[1]
    h_p = _round_up(hidden, LANE)
    cols = max(h_p, _round_up(d_out, LANE))

    # Encoder layer-1 weight with a zero row prepended so the eps column folded
    # into the input tile contributes nothing; hidden axis zero-padded to h_p.
    we1 = jnp.concatenate(
        [jnp.zeros((1, hidden), jnp.float32), params["we1"].astype(jnp.float32)], axis=0)
    we1 = _pad_to(we1, (1 + d_in, h_p))

    # Five small row parameters packed into one resident (8, cols) VMEM slab.
    rows = jnp.zeros((SUBLANE, cols), jnp.float32)
    rows = rows.at[0, :hidden].set(params["be1"][0])      # be1
    rows = rows.at[1, :hidden].set(params["we2"][:, 0])   # we2 (H,1) -> row
    rows = rows.at[2, :hidden].set(params["wd1"][0])      # wd1 (1,H)
    rows = rows.at[3, :hidden].set(params["bd1"][0])      # bd1 (1,H)
    rows = rows.at[4, :d_out].set(params["bd2"][0])       # bd2 (1,D_out)

    # Decoder layer-2 weight: pad only the contraction (hidden) axis; output
    # axis stays at d_out so the kernel writes the final layout directly.
    wd2 = _pad_to(params["wd2"].astype(jnp.float32), (h_p, d_out))

    # Tiny (1,1) latent-head params -> one SMEM scalar vector.
    scalars = jnp.stack([
        params["be2"][0, 0],
        params["wmu"][0, 0], params["bmu"][0, 0],
        params["wls"][0, 0], params["bls"][0, 0],
    ]).astype(jnp.float32)

    return dict(scalars=scalars, we1=we1, rows=rows, wd2=wd2)


def vae_forward(x, prepped, eps, *, batch_tile=128):
    """x: [B, d_in] f32 ; eps: [B, LATENT_DIM] f32 ; prepped = prepare_params(params).

    batch_tile: 128 keeps >=2 parallel tiles for v7x's two TensorCores at B=256;
    on single-TC v5e/v6e pass batch_tile=B to collapse to one grid step.
    """
    B, d_in = x.shape
    h_p = prepped["we1"].shape[1]
    d_out = prepped["wd2"].shape[1]
    cols = prepped["rows"].shape[1]
    assert prepped["we1"].shape[0] == 1 + d_in

    # Fold eps into the input tile as column 0 -> one input ref, one DMA per tile.
    xa = jnp.concatenate([eps.astype(jnp.float32), x.astype(jnp.float32)], axis=1)

    tb = min(batch_tile, _round_up(B, SUBLANE))
    b_p = _round_up(B, tb)
    if b_p != B:
        xa = _pad_to(xa, (b_p, 1 + d_in))

    kernel = functools.partial(_vae_kernel, h_p=h_p, d_out=d_out)

    out = pl.pallas_call(
        kernel,
        out_shape=jax.ShapeDtypeStruct((b_p, d_out), jnp.float32),
        grid=(b_p // tb,),
        in_specs=[
            pl.BlockSpec(memory_space=pltpu.MemorySpace.SMEM),   # latent-head scalars
            pl.BlockSpec((tb, 1 + d_in), lambda i: (i, 0)),      # [eps | x] batch tile
            pl.BlockSpec((1 + d_in, h_p), lambda i: (0, 0)),     # we1 (resident)
            pl.BlockSpec((SUBLANE, cols), lambda i: (0, 0)),     # packed row params
            pl.BlockSpec((h_p, d_out), lambda i: (0, 0)),        # wd2 (resident)
        ],
        out_specs=pl.BlockSpec((tb, d_out), lambda i: (i, 0)),
        compiler_params=pltpu.CompilerParams(
            dimension_semantics=("parallel",),
            vmem_limit_bytes=32 * 1024 * 1024,
        ),
    )(prepped["scalars"], xa, prepped["we1"], prepped["rows"], prepped["wd2"])

    if b_p != B:
        out = out[:B]
    return out


def init_params(key, d_in, hidden, d_out):
    """Deterministic PyTorch-style init; Linear weights stored as (in, out)."""
    def linear(key, fan_in, fan_out):
        k1, k2 = jax.random.split(key)
        bound = 1.0 / jnp.sqrt(jnp.float32(fan_in))
        w = jax.random.uniform(k1, (fan_in, fan_out), jnp.float32, -bound, bound)
        b = jax.random.uniform(k2, (1, fan_out), jnp.float32, -bound, bound)
        return w, b

    keys = jax.random.split(key, 6)
    we1, be1 = linear(keys[0], d_in, hidden)          # encoder layer 1
    we2, be2 = linear(keys[1], hidden, 1)             # encoder layer 2 -> h_enc dim 1
    wmu, bmu = linear(keys[2], 1, LATENT_DIM)         # _enc_mu
    wls, bls = linear(keys[3], 1, LATENT_DIM)         # _enc_log_sigma
    wd1, bd1 = linear(keys[4], LATENT_DIM, hidden)    # decoder layer 1
    wd2, bd2 = linear(keys[5], hidden, d_out)         # decoder layer 2
    return dict(
        we1=we1, be1=be1, we2=we2, be2=be2,
        wmu=wmu, bmu=bmu, wls=wls, bls=bls,
        wd1=wd1, bd1=bd1, wd2=wd2, bd2=bd2,
    )


def _reference(x, p, eps):
    """Pure-JAX reference of the same forward pass (for correctness check)."""
    h = jnp.maximum(x @ p["we1"] + p["be1"], 0.0)
    h_enc = h @ p["we2"] + p["be2"]
    mu = h_enc @ p["wmu"] + p["bmu"]
    sigma = jnp.exp(h_enc @ p["wls"] + p["bls"])
    z = mu + sigma * eps
    d = jnp.maximum(z @ p["wd1"] + p["bd1"], 0.0)
    return d @ p["wd2"] + p["bd2"]


if __name__ == "__main__":
    # Small but grid-exercising shapes: 2 batch tiles of 128 rows.
    B, D_IN, HIDDEN, D_OUT = 256, 16, 32, 16

    key = jax.random.PRNGKey(0)
    k_x, k_p, k_eps = jax.random.split(key, 3)

    x = jax.random.normal(k_x, (B, D_IN), jnp.float32)
    params = init_params(k_p, D_IN, HIDDEN, D_OUT)
    eps = jax.random.normal(k_eps, (B, LATENT_DIM), jnp.float32)

    # One-time parameter prep (hoisted out of the hot path), then a jitted forward.
    prepped = jax.tree_util.tree_map(jax.block_until_ready, prepare_params(params))
    fwd = jax.jit(vae_forward)

    out = jax.block_until_ready(fwd(x, prepped, eps))

    ref = _reference(x, params, eps)
    assert out.shape == (B, D_OUT)
    assert jnp.allclose(out, ref, atol=1e-5, rtol=1e-5)

    print("KERNEL_OK")
</pallas_src>

<mosaic_0001>
module attributes {stable_mosaic.version = 11 : i64} {
  func.func @_vae_kernel(%arg0: i32, %arg1: memref<5xf32, #tpu.memory_space<smem>>, %arg2: memref<128x17xf32, #tpu.memory_space<vmem>>, %arg3: memref<17x128xf32, #tpu.memory_space<vmem>>, %arg4: memref<8x128xf32, #tpu.memory_space<vmem>>, %arg5: memref<128x16xf32, #tpu.memory_space<vmem>>, %arg6: memref<128x16xf32, #tpu.memory_space<vmem>>) attributes {dimension_semantics = [#tpu.dimension_semantics<parallel>], iteration_bounds = array<i64: 2>, scalar_prefetch = 0 : i64, scratch_operands = 0 : i64, tpu.core_type = #tpu.core_type<tc>, window_params = [{transform_indices = @transform_0, window_bounds = array<i64: 5>}, {transform_indices = @transform_1, window_bounds = array<i64: 128, 17>}, {pipeline_mode = #tpu.pipeline_mode<synchronous>, transform_indices = @transform_2, window_bounds = array<i64: 17, 128>}, {pipeline_mode = #tpu.pipeline_mode<synchronous>, transform_indices = @transform_3, window_bounds = array<i64: 8, 128>}, {pipeline_mode = #tpu.pipeline_mode<synchronous>, transform_indices = @transform_4, window_bounds = array<i64: 128, 16>}, {transform_indices = @transform_5, window_bounds = array<i64: 128, 16>}]} {
    %c0 = arith.constant 0 : index
    %c0_0 = arith.constant 0 : index
    %0 = vector.load %arg2[%c0, %c0_0] : memref<128x17xf32, #tpu.memory_space<vmem>>, vector<128x17xf32>
    %c0_1 = arith.constant 0 : index
    %c0_2 = arith.constant 0 : index
    %1 = vector.load %arg4[%c0_1, %c0_2] : memref<8x128xf32, #tpu.memory_space<vmem>>, vector<1x128xf32>
    %c1 = arith.constant 1 : index
    %c0_3 = arith.constant 0 : index
    %2 = vector.load %arg4[%c1, %c0_3] : memref<8x128xf32, #tpu.memory_space<vmem>>, vector<1x128xf32>
    %c2 = arith.constant 2 : index
    %c0_4 = arith.constant 0 : index
    %3 = vector.load %arg4[%c2, %c0_4] : memref<8x128xf32, #tpu.memory_space<vmem>>, vector<1x128xf32>
    %c3 = arith.constant 3 : index
    %c0_5 = arith.constant 0 : index
    %4 = vector.load %arg4[%c3, %c0_5] : memref<8x128xf32, #tpu.memory_space<vmem>>, vector<1x128xf32>
    %c4 = arith.constant 4 : index
    %c0_6 = arith.constant 0 : index
    %5 = vector.load %arg4[%c4, %c0_6] : memref<8x128xf32, #tpu.memory_space<vmem>>, vector<1x16xf32>
    %c0_7 = arith.constant 0 : index
    %c0_8 = arith.constant 0 : index
    %6 = vector.load %arg3[%c0_7, %c0_8] : memref<17x128xf32, #tpu.memory_space<vmem>>, vector<17x128xf32>
    %cst = arith.constant dense<0.000000e+00> : vector<128x128xf32>
    %7 = tpu.matmul %0, %6, %cst {dimension_numbers = #tpu.dot_dimension_numbers<[1], [0], [0], [1], [0, 0, 1, 1], [], []>} : vector<128x17xf32>, vector<17x128xf32>, vector<128x128xf32> -> vector<128x128xf32>
    %8 = vector.broadcast %1 : vector<1x128xf32> to vector<128x128xf32>
    %9 = arith.addf %7, %8 : vector<128x128xf32>
    %cst_9 = arith.constant 0.000000e+00 : f32
    %10 = vector.broadcast %cst_9 : f32 to vector<128x128xf32>
    %11 = arith.maximumf %9, %10 : vector<128x128xf32>
    %12 = vector.broadcast %2 : vector<1x128xf32> to vector<128x128xf32>
    %13 = arith.mulf %11, %12 : vector<128x128xf32>
    %cst_10 = arith.constant dense<0.000000e+00> : vector<128xf32>
    %14 = vector.multi_reduction <add>, %13, %cst_10 [1] : vector<128x128xf32> to vector<128xf32>
    %15 = vector.shape_cast %14 : vector<128xf32> to vector<128x1xf32>
    %c0_11 = arith.constant 0 : index
    %16 = memref.load %arg1[%c0_11] : memref<5xf32, #tpu.memory_space<smem>>
    %17 = vector.broadcast %16 : f32 to vector<128x1xf32>
    %18 = arith.addf %15, %17 : vector<128x1xf32>
    %c1_12 = arith.constant 1 : index
    %19 = memref.load %arg1[%c1_12] : memref<5xf32, #tpu.memory_space<smem>>
    %20 = vector.broadcast %19 : f32 to vector<128x1xf32>
    %21 = arith.mulf %18, %20 : vector<128x1xf32>
    %c2_13 = arith.constant 2 : index
    %22 = memref.load %arg1[%c2_13] : memref<5xf32, #tpu.memory_space<smem>>
    %23 = vector.broadcast %22 : f32 to vector<128x1xf32>
    %24 = arith.addf %21, %23 : vector<128x1xf32>
    %c3_14 = arith.constant 3 : index
    %25 = memref.load %arg1[%c3_14] : memref<5xf32, #tpu.memory_space<smem>>
    %26 = vector.broadcast %25 : f32 to vector<128x1xf32>
    %27 = arith.mulf %18, %26 : vector<128x1xf32>
    %c4_15 = arith.constant 4 : index
    %28 = memref.load %arg1[%c4_15] : memref<5xf32, #tpu.memory_space<smem>>
    %29 = vector.broadcast %28 : f32 to vector<128x1xf32>
    %30 = arith.addf %27, %29 : vector<128x1xf32>
    %31 = vector.extract_strided_slice %0 {offsets = [0, 0], sizes = [128, 1], strides = [1, 1]} : vector<128x17xf32> to vector<128x1xf32>
    %32 = math.exp %30 : vector<128x1xf32>
    %33 = arith.mulf %32, %31 : vector<128x1xf32>
    %34 = arith.addf %33, %24 : vector<128x1xf32>
    %35 = vector.broadcast %34 : vector<128x1xf32> to vector<128x128xf32>
    %36 = vector.broadcast %3 : vector<1x128xf32> to vector<128x128xf32>
    %37 = arith.mulf %35, %36 : vector<128x128xf32>
    %38 = vector.broadcast %4 : vector<1x128xf32> to vector<128x128xf32>
    %39 = arith.addf %37, %38 : vector<128x128xf32>
    %cst_16 = arith.constant 0.000000e+00 : f32
    %40 = vector.broadcast %cst_16 : f32 to vector<128x128xf32>
    %41 = arith.maximumf %39, %40 : vector<128x128xf32>
    %c0_17 = arith.constant 0 : index
    %c0_18 = arith.constant 0 : index
    %42 = vector.load %arg5[%c0_17, %c0_18] : memref<128x16xf32, #tpu.memory_space<vmem>>, vector<128x16xf32>
    %cst_19 = arith.constant dense<0.000000e+00> : vector<128x16xf32>
    %43 = tpu.matmul %41, %42, %cst_19 {dimension_numbers = #tpu.dot_dimension_numbers<[1], [0], [0], [1], [0, 0, 1, 1], [], []>} : vector<128x128xf32>, vector<128x16xf32>, vector<128x16xf32> -> vector<128x16xf32>
    %44 = vector.broadcast %5 : vector<1x16xf32> to vector<128x16xf32>
    %45 = arith.addf %43, %44 : vector<128x16xf32>
    %c0_20 = arith.constant 0 : index
    %c0_21 = arith.constant 0 : index
    %46 = vector.load %arg6[%c0_20, %c0_21] : memref<128x16xf32, #tpu.memory_space<vmem>>, vector<128x16xf32>
    tpu.vector_store %arg6[%c0_20, %c0_21], %45 {strides = array<i32>} : memref<128x16xf32, #tpu.memory_space<vmem>>, vector<128x16xf32>,
    return
  }
  func.func @transform_0(%arg0: i32) -> i32 {
    %c0_i32 = arith.constant 0 : i32
    %c0_i32_0 = arith.constant 0 : i32
    return %c0_i32 : i32
  }
  func.func @transform_1(%arg0: i32) -> (i32, i32) {
    %c0_i32 = arith.constant 0 : i32
    %c0_i32_0 = arith.constant 0 : i32
    return %arg0, %c0_i32 : i32, i32
  }
  func.func @transform_2(%arg0: i32) -> (i32, i32) {
    %c0_i32 = arith.constant 0 : i32
    %c0_i32_0 = arith.constant 0 : i32
    %c0_i32_1 = arith.constant 0 : i32
    return %c0_i32, %c0_i32_0 : i32, i32
  }
  func.func @transform_3(%arg0: i32) -> (i32, i32) {
    %c0_i32 = arith.constant 0 : i32
    %c0_i32_0 = arith.constant 0 : i32
    %c0_i32_1 = arith.constant 0 : i32
    return %c0_i32, %c0_i32_0 : i32, i32
  }
  func.func @transform_4(%arg0: i32) -> (i32, i32) {
    %c0_i32 = arith.constant 0 : i32
    %c0_i32_0 = arith.constant 0 : i32
    %c0_i32_1 = arith.constant 0 : i32
    return %c0_i32, %c0_i32_0 : i32, i32
  }
  func.func @transform_5(%arg0: i32) -> (i32, i32) {
    %c0_i32 = arith.constant 0 : i32
    %c0_i32_0 = arith.constant 0 : i32
    return %arg0, %c0_i32 : i32, i32
  }
}

</mosaic_0001>

<bundles_post_ra>
// kernel: vae_forward.1
= control target key start
LH: loop header
LB: loop body
LE: loop exit
PB: predicated region body
PF: predicated region fallthrough
CT: control target
= control target key end

     0   :  { %10 = vsyncpa [#allocation3], 0  ;;  %s1397_s18 = smov 0   ;;  %s1860_s0 = inlined_call_operand.vmem [shape: f32[5], index: 0, kind: input, shape index: {}]   ;;  %s1861_s1 = inlined_call_operand.vmem [shape: f32[256,17], index: 1, kind: input, shape index: {}]   ;;  %s1862_s2 = inlined_call_operand.vmem [shape: f32[17,128], index: 2, kind: input, shape index: {}]   ;;  %s1863_s3 = inlined_call_operand.vmem [shape: f32[8,128], index: 3, kind: input, shape index: {}]   ;;  %s1864_s4 = inlined_call_operand.vmem [shape: f32[128,16], index: 4, kind: input, shape index: {}]   ;;  %s1865_s5 = inlined_call_operand.vmem [shape: f32[256,16], index: 5, kind: output, shape index: {}]  }
   0x1 LB: > { %s1076_s19 = sadd.s32 4294967295, %s1363_s18   ;;  %p1078_p0 = scmp.ge.s32.totalorder %s1363_s18, 1  ;;  %s1363_s18 = sphi %s1397_s18, %s16_s18  }
   0x2   : > { %p157_p1 = scmp.lt.s32.totalorder %s1363_s18, 3  ;;  %s170_s22 = sshll.u32 %s1860_s0, 4  ;;  %s171_s22 = int_to_ptr.vmem [resolvable:$true] %s170_s22 }
   0x3   : > { %p1412_p3 = scmp.eq.s32.totalorder %s1076_s19, 0  ;;  %s1338_s25 = scalar_lea.vmem %s171_s22, 16 }
   0x4   : > { %p1408_p2 = pnand %p1078_p0, %p157_p1  ;;  %p1339_p6 = scmp.ne.s32.totalorder %s171_s22, %s1338_s25 }
   0x5   : > { %p1346_p10 = scmp.lt.s32.totalorder %s171_s22, %s171_s22  ;;  %p1347_p11 = scmp.lt.s32.totalorder %s1338_s25, %s1338_s25 }
   0x6   : > { %p1288_p4 = pneg %p1408_p2 }
   0x7   : > { %p1348_p12 = por %p1347_p11, %p1346_p10 }
   0x8   : > { %p1289_p5 = pnand %p1412_p3, %p1288_p4 }
   0xa   : > { %p1340_p7 = pneg %p1289_p5 }
   0xc   : > { %p1341_p8 = pnand %p1340_p7, %p1339_p6 }
   0xe   : > { %p1342_p9 = pneg %p1341_p8 }
  0x10   : > { %p1349_p13 = pnand %p1348_p12, %p1342_p9 }
  0x12   : > { %1352 = shalt.err (!%p1349_p13)
}
  0x13   : > { %s1365_s26 = smov [#allocation2]   ;;  %201 = sbr.rel (%p1408_p2) target bundleno = 778 (0x30a), region = 40 }
  0x14   : > { %1291 = dma.vmem_to_smem (!%p1289_p5), %s171_s22, 16, %s1365_s26, [#allocation3]  }
  0x18   : > { %1358 = dma.done.wait (%p1412_p3), [#allocation3], 16  }
  0x19   : > { %1360 = vsyncadd (%p1412_p3), [#allocation3], 4294967280 }
  0x1a   : > { %207 = sfence }
  0x1b   : > { %v265_v0 = vld [vmem:[%s1862_s2 + $0x10] sm:$0x1]  ;;  %vm319_vm0 = vcmask 1040384   ;;  %v264_v1 = vld [vmem:[%s1862_s2 + $0x8] sm:$0xff]  ;;  %s1083_s6 = sshll.u32 %s1076_s19, 4  ;;  %v263_v2 = vld [vmem:[%s1862_s2] sm:$0xff] }
  0x1c   : > { %1166 = vmatprep.subr.msk.mxu0 %vm319_vm0, %v265_v0  ;;  %p231_p0 = scmp.lt.s32.totalorder %s1083_s6, 31  ;;  %vm270_vm1 = vcmask 138240   ;;  %v1528_v20 = vld [vmem:[%s1863_s3] ss:$0 sm:$0xff]  ;;  %v1534_v26 = vld [vmem:[%s1863_s3 + $0x1] ss:$0 sm:$0xff] }
  0x1d   : > { %1167 = vmatpush3.msk.msra.mxu0 %vm319_vm0, %v265_v0  ;;  %s536_s17 = sld [smem:[#allocation2]]  ;;  %vm991_vm2 = vcmask 130048  }
  0x1e   : > { %1168 = vmatprep.subr.mxu0 %v264_v1  ;;  %s1869_s6 = smov (!%p231_p0, %s1083_s6), 31  ;;  %s1108_s19 = sld [smem:[#allocation2 + $0x3]] }
  0x1f   : > { %1169 = vmatpush3.msra.mxu0 %v264_v1  ;;  %s1084_s9 = sshll.u32 %s1869_s6, 3  ;;  %s1109_s20 = sld [smem:[#allocation2 + $0x4]] }
  0x20   : > { %1170 = vmatprep.subr.mxu0 %v263_v2  ;;  %s1443_s12 = scalar_lea.vmem %s1861_s1, %s1084_s9  ;;  %s1106_s21 = sld [smem:[#allocation2 + $0x1]] }
  0x21   : > { %1171 = vmatpush3.msra.mxu0 %v263_v2  ;;  %v1446_v3 = vld [vmem:[%s1443_s12] sm:$0xff]  ;;  %v1449_v4 = vld [vmem:[%s1443_s12 + $0x8] sm:$0xff]  ;;  %v1452_v5 = vld [vmem:[%s1443_s12 + $0x10] sm:$0xff]  ;;  %s1107_s22 = sld [smem:[#allocation2 + $0x2]] }
  0x22   : > { %1172 = vmatprep.mubr.msk.f32.mxu0 %vm270_vm1, %v1446_v3  ;;  %v1461_v6 = vld [vmem:[%s1443_s12 + $0x18] sm:$0xff]  ;;  %v1464_v7 = vld [vmem:[%s1443_s12 + $0x20] sm:$0xff]  ;;  %v1471_v8 = vld [vmem:[%s1443_s12 + $0x28] sm:$0xff] }
  0x23   : > { %1173 = vmatmul.mubr.msk.f32.vlgmr.msra.gmra.mxu0 %vm270_vm1, %v1449_v4  ;;  %v1474_v9 = vld [vmem:[%s1443_s12 + $0x30] sm:$0xff]  ;;  %v1481_v10 = vld [vmem:[%s1443_s12 + $0x38] sm:$0xff]  ;;  %v1484_v11 = vld [vmem:[%s1443_s12 + $0x40] sm:$0xff] }
  0x24   : > { %1175 = vmatprep.mubr.msk.f32.mxu0 %vm270_vm1, %v1452_v5  ;;  %v1491_v12 = vld [vmem:[%s1443_s12 + $0x48] sm:$0xff]  ;;  %v1494_v13 = vld [vmem:[%s1443_s12 + $0x50] sm:$0xff]  ;;  %v1501_v14 = vld [vmem:[%s1443_s12 + $0x58] sm:$0xff] }
  0x25   : > { %v1504_v15 = vld [vmem:[%s1443_s12 + $0x60] sm:$0xff]  ;;  %v1511_v16 = vld [vmem:[%s1443_s12 + $0x68] sm:$0xff]  ;;  %v1514_v17 = vld [vmem:[%s1443_s12 + $0x70] sm:$0xff] }
  0x26   : > { %v1521_v18 = vld [vmem:[%s1443_s12 + $0x78] sm:$0xff] }
  0x27   : > { %1176 = vmatmul.mubr.msk.f32.gmra.mxu0 %vm270_vm1, %v1461_v6 }
  0x28   : > { %1178 = vmatprep.mubr.msk.f32.mxu0 %vm270_vm1, %v1464_v7 }
  0x2b   : > { %1179 = vmatmul.mubr.msk.f32.gmra.mxu0 %vm270_vm1, %v1471_v8 }
  0x2c   : > { %1181 = vmatprep.mubr.msk.f32.mxu0 %vm270_vm1, %v1474_v9 }
  0x2f   : > { %1182 = vmatmul.mubr.msk.f32.gmra.mxu0 %vm270_vm1, %v1481_v10 }
  0x30   : > { %1184 = vmatprep.mubr.msk.f32.mxu0 %vm270_vm1, %v1484_v11 }
  0x33   : > { %1185 = vmatmul.mubr.msk.f32.gmra.mxu0 %vm270_vm1, %v1491_v12 }
  0x34   : > { %1187 = vmatprep.mubr.msk.f32.mxu0 %vm270_vm1, %v1494_v13 }
  0x37   : > { %1188 = vmatmul.mubr.msk.f32.gmra.mxu0 %vm270_vm1, %v1501_v14 }
  0x38   : > { %1190 = vmatprep.mubr.msk.f32.mxu0 %vm270_vm1, %v1504_v15 }
  0x3b   : > { %1191 = vmatmul.mubr.msk.f32.gmra.mxu0 %vm270_vm1, %v1511_v16 }
  0x3c   : > { %1193 = vmatprep.mubr.msk.f32.mxu0 %vm270_vm1, %v1514_v17 }
  0x3f   : > { %1194 = vmatmul.mubr.msk.f32.gmra.mxu0 %vm270_vm1, %v1521_v18 }
  0xe3   : > { %v1174_v19 = vpop.f32.mrf.mxu0 }
  0xe4   : > { %v395_v35 = vadd.f32 %v1174_v19, %v1528_v20 }
  0xe5   : > { %v389_v21 = vpop.f32.mrf.mxu0 }
  0xe6   : > { %v390_v22 = vadd.f32 %v1528_v20, %v389_v21  ;;  %v469_v43 = vmax.f32 %v395_v35, 0.0 }
  0xe7   : > { %v1177_v23 = vpop.f32.mrf.mxu0 }
  0xe8   : > { %v468_v24 = vmax.f32 %v390_v22, 0.0  ;;  %v405_v55 = vadd.f32 %v1177_v23, %v1528_v20  ;;  %v489_v57 = vmul.f32 %v1534_v26, %v469_v43  ;;  %v836_v43 = vld [vmem:[%s1864_s4 + $0x50] sm:$0xff] }
  0xe9   : > { %v399_v25 = vpop.f32.mrf.mxu0 }
  0xea   : > { %v488_v27 = vmul.f32 %v1534_v26, %v468_v24  ;;  %v400_v44 = vadd.f32 %v1528_v20, %v399_v25  ;;  %v471_v63 = vmax.f32 %v405_v55, 0.0 }
  0xeb   : > { %v1180_v28 = vpop.f32.mrf.mxu0 }
  0xec   : > { %504 = vadd.xlane.f32.xlu0 %v488_v27  ;;  %v470_v56 = vmax.f32 %v400_v44, 0.0  ;;  %v415_v23 = vadd.f32 %v1180_v28, %v1528_v20  ;;  %v491_v25 = vmul.f32 %v1534_v26, %v471_v63  ;;  %v835_v44 = vld [vmem:[%s1864_s4 + $0x48] sm:$0xff] }
  0xed   : > { %v409_v29 = vpop.f32.mrf.mxu0 }
  0xee   : > { %v410_v0 = vadd.f32 %v1528_v20, %v409_v29  ;;  %v490_v1 = vmul.f32 %v1534_v26, %v470_v56 }
  0xef   : > { %v1183_v30 = vpop.f32.mrf.mxu0 }
  0xf0   : > { %v425_v31 = vadd.f32 %v1183_v30, %v1528_v20  ;;  %v472_v24 = vmax.f32 %v410_v0, 0.0 }
  0xf1   : > { %v419_v32 = vpop.f32.mrf.mxu0 }
  0xf2   : > { %v475_v33 = vmax.f32 %v425_v31, 0.0  ;;  %v420_v34 = vadd.f32 %v1528_v20, %v419_v32  ;;  %v473_v31 = vmax.f32 %v415_v23, 0.0  ;;  %v492_v32 = vmul.f32 %v1534_v26, %v472_v24 }
  0xf3   : > { %v1186_v36 = vpop.f32.mrf.mxu0 }
  0xf4   : > { %v474_v37 = vmax.f32 %v420_v34, 0.0  ;;  %v435_v38 = vadd.f32 %v1186_v36, %v1528_v20  ;;  %v495_v39 = vmul.f32 %v1534_v26, %v475_v33  ;;  %v493_v35 = vmul.f32 %v1534_v26, %v473_v31 }
  0xf5   : > { %v429_v40 = vpop.f32.mrf.mxu0 }
  0xf6   : > { %v477_v41 = vmax.f32 %v435_v38, 0.0  ;;  %518 = vadd.xlane.f32.xlu0 %v495_v39  ;;  %v430_v42 = vadd.f32 %v1528_v20, %v429_v40  ;;  %v494_v48 = vmul.f32 %v1534_v26, %v474_v37  ;;  %v1366_v39 = vmov 0   ;;  %v840_v40 = vld [vmem:[%s1864_s4 + $0x70] sm:$0xff] }
  0xf7   : > { %v1189_v45 = vpop.f32.mrf.mxu0  ;;  %1305 = vset.pattern.permute.xlu1 %v1366_v39  ;;  %1304 = vset.pattern.permute.xlu0 %v1366_v39 }
  0xf8   : > { %v476_v46 = vmax.f32 %v430_v42, 0.0  ;;  %v497_v47 = vmul.f32 %v1534_v26, %v477_v41  ;;  %v445_v49 = vadd.f32 %v1189_v45, %v1528_v20  ;;  %v838_v41 = vld [vmem:[%s1864_s4 + $0x60] sm:$0xff]  ;;  %v837_v42 = vld [vmem:[%s1864_s4 + $0x58] sm:$0xff] }
  0xf9   : > { %v439_v50 = vpop.f32.mrf.mxu0  ;;  %v834_v45 = vld [vmem:[%s1864_s4 + $0x40] sm:$0xff] }
  0xfa   : > { %522 = vadd.xlane.f32.xlu1 %v497_v47  ;;  %516 = vadd.xlane.f32.xlu0 %v494_v48  ;;  %v479_v51 = vmax.f32 %v445_v49, 0.0  ;;  %v496_v52 = vmul.f32 %v1534_v26, %v476_v46  ;;  %v440_v53 = vadd.f32 %v1528_v20, %v439_v50  ;;  %v833_v46 = vld [vmem:[%s1864_s4 + $0x38] sm:$0xff]  ;;  %v832_v47 = vld [vmem:[%s1864_s4 + $0x30] sm:$0xff]  ;;  %v831_v48 = vld [vmem:[%s1864_s4 + $0x28] sm:$0xff]  ;;  %v1600_v49 = vstv %s536_s17 }
  0xfb   : > { %v1192_v54 = vpop.f32.mrf.mxu0 }
  0xfc   : > { %v478_v59 = vmax.f32 %v440_v53, 0.0  ;;  %v499_v60 = vmul.f32 %v1534_v26, %v479_v51  ;;  %v455_v61 = vadd.f32 %v1192_v54, %v1528_v20  ;;  %v1606_v54 = vstv %s1109_s20 }
  0xfd   : > { %v449_v58 = vpop.f32.mrf.mxu0 }
  0xfe   : > { %520 = vadd.xlane.f32.xlu1 %v496_v52  ;;  %506 = vadd.xlane.f32.xlu0 %v489_v57  ;;  %v481_v2 = vmax.f32 %v455_v61, 0.0  ;;  %v498_v19 = vmul.f32 %v1534_v26, %v478_v59  ;;  %v450_v21 = vadd.f32 %v1528_v20, %v449_v58  ;;  %v1603_v52 = vstv %s1108_s19  ;;  %s1823_s19 = scalar_lea.vmem %s1865_s5, %s1084_s9 }
  0xff   : > { %v1195_v62 = vpop.f32.mrf.mxu0 }
 0x100   : > { %v480_v27 = vmax.f32 %v450_v21, 0.0  ;;  %v501_v29 = vmul.f32 %v1534_v26, %v481_v2  ;;  %v465_v33 = vadd.f32 %v1195_v62, %v1528_v20 }
 0x101   : > { %v459_v22 = vpop.f32.mrf.mxu0 }
 0x102   : > { %526 = vadd.xlane.f32.xlu1 %v499_v60  ;;  %508 = vadd.xlane.f32.xlu0 %v490_v1  ;;  %v460_v30 = vadd.f32 %v1528_v20, %v459_v22  ;;  %v500_v28 = vmul.f32 %v1534_v26, %v480_v27  ;;  %v483_v36 = vmax.f32 %v465_v33, 0.0  ;;  %v841_v20 = vld [vmem:[%s1864_s4 + $0x78] sm:$0xff] }
 0x103   : > { %1252 = vmatprep.subr.mxu1 %v841_v20  ;;  %1196 = vmatprep.subr.mxu0 %v841_v20 }
 0x104   : > { %v482_v34 = vmax.f32 %v460_v30, 0.0  ;;  %v503_v38 = vmul.f32 %v1534_v26, %v483_v36  ;;  %1268 = vmatpush3.msra.mxu1 %v841_v20  ;;  %1197 = vmatpush3.msra.mxu0 %v841_v20 }
 0x105   : > { %1253 = vmatprep.subr.mxu1 %v840_v40  ;;  %1198 = vmatprep.subr.mxu0 %v840_v40 }
 0x106   : > { %524 = vadd.xlane.f32.xlu1 %v498_v19  ;;  %510 = vadd.xlane.f32.xlu0 %v491_v25  ;;  %v502_v37 = vmul.f32 %v1534_v26, %v482_v34  ;;  %v839_v26 = vld [vmem:[%s1864_s4 + $0x68] sm:$0xff] }
 0x107   : > { %1269 = vmatpush3.msra.mxu1 %v840_v40  ;;  %1199 = vmatpush3.msra.mxu0 %v840_v40  ;;  %v1641_v40 = vstv %s1106_s21 }
 0x108   : > { %1254 = vmatprep.subr.mxu1 %v839_v26  ;;  %1200 = vmatprep.subr.mxu0 %v839_v26 }
 0x109   : > { %1270 = vmatpush3.msra.mxu1 %v839_v26  ;;  %1201 = vmatpush3.msra.mxu0 %v839_v26 }
 0x10a   : > { %530 = vadd.xlane.f32.xlu1 %v501_v29  ;;  %512 = vadd.xlane.f32.xlu0 %v492_v32 }
 0x10b   : > { %1255 = vmatprep.subr.mxu1 %v838_v41  ;;  %1202 = vmatprep.subr.mxu0 %v838_v41 }
 0x10c   : > { %1271 = vmatpush3.msra.mxu1 %v838_v41  ;;  %1203 = vmatpush3.msra.mxu0 %v838_v41 }
 0x10d   : > { %1256 = vmatprep.subr.mxu1 %v837_v42  ;;  %1204 = vmatprep.subr.mxu0 %v837_v42 }
 0x10e   : > { %528 = vadd.xlane.f32.xlu1 %v500_v28  ;;  %514 = vadd.xlane.f32.xlu0 %v493_v35 }
 0x10f   : > { %1272 = vmatpush3.msra.mxu1 %v837_v42  ;;  %1205 = vmatpush3.msra.mxu0 %v837_v42 }
 0x110   : > { %1257 = vmatprep.subr.mxu1 %v836_v43  ;;  %1206 = vmatprep.subr.mxu0 %v836_v43 }
 0x111   : > { %1273 = vmatpush3.msra.mxu1 %v836_v43  ;;  %1207 = vmatpush3.msra.mxu0 %v836_v43 }
 0x112   : > { %532 = vadd.xlane.f32.xlu1 %v502_v37  ;;  %1258 = vmatprep.subr.mxu1 %v835_v44 }
 0x113   : > { %1208 = vmatprep.subr.mxu0 %v835_v44  ;;  %1274 = vmatpush3.msra.mxu1 %v835_v44 }
 0x114   : > { %1209 = vmatpush3.msra.mxu0 %v835_v44  ;;  %1259 = vmatprep.subr.mxu1 %v834_v45 }
 0x115   : > { %1210 = vmatprep.subr.mxu0 %v834_v45  ;;  %1275 = vmatpush3.msra.mxu1 %v834_v45 }
 0x116   : > { %534 = vadd.xlane.f32.xlu1 %v503_v38  ;;  %1211 = vmatpush3.msra.mxu0 %v834_v45 }
 0x117   : > { %1260 = vmatprep.subr.mxu1 %v833_v46  ;;  %1212 = vmatprep.subr.mxu0 %v833_v46 }
 0x118   : > { %1276 = vmatpush3.msra.mxu1 %v833_v46  ;;  %1213 = vmatpush3.msra.mxu0 %v833_v46 }
 0x119   : > { %1261 = vmatprep.subr.mxu1 %v832_v47  ;;  %1214 = vmatprep.subr.mxu0 %v832_v47 }
 0x11a   : > { %1277 = vmatpush3.msra.mxu1 %v832_v47  ;;  %1215 = vmatpush3.msra.mxu0 %v832_v47 }
 0x11b   : > { %1262 = vmatprep.subr.mxu1 %v831_v48  ;;  %1216 = vmatprep.subr.mxu0 %v831_v48 }
 0x11c   : > { %1278 = vmatpush3.msra.mxu1 %v831_v48  ;;  %1217 = vmatpush3.msra.mxu0 %v831_v48 }
 0x175   : > { %v505_v50 = vpop.xlane.xlu0 %504 }
 0x176   : > { %v538_v51 = vadd.f32 %v1600_v49, %v505_v50 }
 0x178   : > { %v592_v53 = vmul.f32 %v1603_v52, %v538_v51  ;;  %v556_v50 = vmul.f32 %v1641_v40, %v538_v51 }
 0x17a   : > { %v610_v57 = vadd.f32 %v1606_v54, %v592_v53 }
 0x17c   : > { %v626_v63 = vmul.f32 1.442695, %v610_v57  ;;  %v1655_v57 = vstv %s1107_s22 }
 0x17f   : > { %v519_v55 = vpop.xlane.xlu0 %518 }
 0x180   : > { %v545_v56 = vadd.f32 %v1600_v49, %v519_v55 }
 0x182   : > { %v599_v58 = vmul.f32 %v1603_v52, %v545_v56  ;;  %v563_v46 = vmul.f32 %v1641_v40, %v545_v56 }
 0x183   : > { %v523_v59 = vpop.xlane.xlu1 %522  ;;  %v517_v60 = vpop.xlane.xlu0 %516 }
 0x184   : > { %v617_v61 = vadd.f32 %v1606_v54, %v599_v58  ;;  %v544_v62 = vadd.f32 %v1600_v49, %v517_v60  ;;  %v1614_v1 = vadd.f32 %v1600_v49, %v523_v59 }
 0x186   : > { %v640_v0 = vmul.f32 1.442695, %v617_v61  ;;  %v598_v2 = vmul.f32 %v1603_v52, %v544_v62  ;;  %v601_v24 = vmul.f32 %v1603_v52, %v1614_v1  ;;  %v562_v53 = vmul.f32 %v1641_v40, %v544_v62 }
 0x187   : > { %v521_v19 = vpop.xlane.xlu1 %520  ;;  %v507_v21 = vpop.xlane.xlu0 %506 }
 0x188   : > { %1306 = vpow2.f32 %v640_v0  ;;  %v616_v22 = vadd.f32 %v1606_v54, %v598_v2  ;;  %v1619_v23 = vadd.f32 %v1600_v49, %v507_v21  ;;  %v1624_v27 = vadd.f32 %v1600_v49, %v521_v19 }
 0x189   : > { %1308 = vpow2.f32 %v626_v63  ;;  %v619_v33 = vadd.f32 %v1606_v54, %v601_v24  ;;  %v581_v0 = vadd.f32 %v1655_v57, %v563_v46  ;;  %v574_v19 = vadd.f32 %v1655_v57, %v556_v50 }
 0x18a   : > { %v638_v25 = vmul.f32 1.442695, %v616_v22  ;;  %v593_v31 = vmul.f32 %v1603_v52, %v1619_v23  ;;  %v600_v28 = vmul.f32 %v1603_v52, %v1624_v27  ;;  %v580_v21 = vadd.f32 %v1655_v57, %v562_v53 }
 0x18b   : > { %v527_v29 = vpop.xlane.xlu1 %526  ;;  %v509_v30 = vpop.xlane.xlu0 %508  ;;  %v644_v26 = vmul.f32 1.442695, %v619_v33  ;;  %v830_v33 = vld [vmem:[%s1864_s4 + $0x20] sm:$0xff] }
 0x18c   : > { %v1629_v32 = vadd.f32 %v1600_v49, %v509_v30  ;;  %1310 = vpow2.f32 %v638_v25  ;;  %v611_v34 = vadd.f32 %v1606_v54, %v593_v31  ;;  %v1636_v35 = vadd.f32 %v1600_v49, %v527_v29  ;;  %1263 = vmatprep.subr.mxu1 %v830_v33  ;;  %1218 = vmatprep.subr.mxu0 %v830_v33 }
 0x18d   : > { %v618_v41 = vadd.f32 %v1606_v54, %v600_v28  ;;  %1279 = vmatpush3.msra.mxu1 %v830_v33  ;;  %1219 = vmatpush3.msra.mxu0 %v830_v33  ;;  %v565_v33 = vmul.f32 %v1641_v40, %v1614_v1 }
 0x18e   : > { %v594_v36 = vmul.f32 %v1603_v52, %v1629_v32  ;;  %v628_v38 = vmul.f32 1.442695, %v611_v34  ;;  %v603_v42 = vmul.f32 %v1603_v52, %v1636_v35 }
 0x18f   : > { %v525_v37 = vpop.xlane.xlu1 %524  ;;  %v511_v39 = vpop.xlane.xlu0 %510  ;;  %v642_v60 = vmul.f32 1.442695, %v618_v41  ;;  %v558_v41 = vmul.f32 %v1641_v40, %v1629_v32  ;;  %v583_v1 = vadd.f32 %v1655_v57, %v565_v33 }
 0x190   : > { %v612_v20 = vadd.f32 %v1606_v54, %v594_v36  ;;  %1312 = vpow2.f32 %v628_v38  ;;  %v1647_v44 = vadd.f32 %v1600_v49, %v525_v37  ;;  %v1658_v58 = vadd.f32 %v1600_v49, %v511_v39 }
 0x191   : > { %v621_v61 = vadd.f32 %v1606_v54, %v603_v42  ;;  %v557_v37 = vmul.f32 %v1641_v40, %v1619_v23 }
 0x192   : > { %v630_v43 = vmul.f32 1.442695, %v612_v20  ;;  %v602_v51 = vmul.f32 %v1603_v52, %v1647_v44  ;;  %v595_v29 = vmul.f32 %v1603_v52, %v1658_v58 }
 0x193   : > { %v531_v45 = vpop.xlane.xlu1 %530  ;;  %v513_v56 = vpop.xlane.xlu0 %512  ;;  %v648_v34 = vmul.f32 1.442695, %v621_v61  ;;  %v827_v61 = vld [vmem:[%s1864_s4 + $0x8] sm:$0xff] }
 0x194   : > { %v1651_v47 = vadd.f32 %v1600_v49, %v531_v45  ;;  %1314 = vpow2.f32 %v630_v43  ;;  %v620_v28 = vadd.f32 %v1606_v54, %v602_v51  ;;  %v613_v23 = vadd.f32 %v1606_v54, %v595_v29 }
 0x195   : > { %v1307_v48 = vpop.eup %1306  ;;  %1316 = vpow2.f32 %v644_v26  ;;  %v829_v26 = vld [vmem:[%s1864_s4 + $0x18] sm:$0xff]  ;;  %v575_v51 = vadd.f32 %v1655_v57, %v557_v37 }
 0x196   : > { %v1309_v55 = vpop.eup %1308  ;;  %v605_v59 = vmul.f32 %v1603_v52, %v1651_v47  ;;  %v665_v62 = vmul.f32 %v1307_v48, %v1481_v10  ;;  %v1677_v10 = vadd.f32 %v1600_v49, %v513_v56  ;;  %1318 = vpow2.f32 %v642_v60  ;;  %1264 = vmatprep.subr.mxu1 %v829_v26  ;;  %v828_v48 = vld [vmem:[%s1864_s4 + $0x10] sm:$0xff]  ;;  %1220 = vmatprep.subr.mxu0 %v829_v26 }
 0x197   : > { %v529_v63 = vpop.xlane.xlu1 %528  ;;  %v658_v24 = vmul.f32 %v1309_v55, %v1446_v3  ;;  %v515_v38 = vpop.xlane.xlu0 %514  ;;  %1280 = vmatpush3.msra.mxu1 %v829_v26  ;;  %v646_v50 = vmul.f32 1.442695, %v620_v28  ;;  %1221 = vmatpush3.msra.mxu0 %v829_v26  ;;  %v569_v28 = vmul.f32 %v1641_v40, %v1651_v47 }
 0x198   : > { %v623_v2 = vadd.f32 %v1606_v54, %v605_v59  ;;  %v1671_v22 = vadd.f32 %v1600_v49, %v529_v63  ;;  %v681_v31 = vadd.f32 %v665_v62, %v581_v0  ;;  %v596_v45 = vmul.f32 %v1603_v52, %v1677_v10  ;;  %1265 = vmatprep.subr.mxu1 %v828_v48 }
 0x199   : > { %v1311_v25 = vpop.eup %1310  ;;  %v674_v43 = vadd.f32 %v658_v24, %v574_v19  ;;  %v1706_v55 = vadd.f32 %v1600_v49, %v515_v38  ;;  %v576_v63 = vadd.f32 %v1655_v57, %v558_v41  ;;  %1281 = vmatpush3.msra.mxu1 %v828_v48  ;;  %1222 = vmatprep.subr.mxu0 %v828_v48  ;;  %v826_v24 = vld [vmem:[%s1864_s4] sm:$0xff] }
 0x19a   : > { %v652_v30 = vmul.f32 1.442695, %v623_v2  ;;  %v604_v3 = vmul.f32 %v1603_v52, %v1671_v22  ;;  %727 = vperm.xlu1 %1305, %v681_v31   ;;  %v664_v20 = vmul.f32 %v1311_v25, %v1474_v9  ;;  %v632_v2 = vmul.f32 1.442695, %v613_v23  ;;  %1266 = vmatprep.subr.mxu1 %v827_v61 }
 0x19b   : > { %v533_v36 = vpop.xlane.xlu1 %532  ;;  %v614_v19 = vadd.f32 %v1606_v54, %v596_v45  ;;  %1282 = vmatpush3.msra.mxu1 %v827_v61  ;;  %1223 = vmatpush3.msra.mxu0 %v828_v48  ;;  %v587_v47 = vadd.f32 %v1655_v57, %v569_v28  ;;  %v568_v26 = vmul.f32 %v1641_v40, %v1671_v22 }
 0x19c   : > { %1320 = vpow2.f32 %v652_v30  ;;  %v1688_v39 = vadd.f32 %v1600_v49, %v533_v36  ;;  %v622_v42 = vadd.f32 %v1606_v54, %v604_v3  ;;  %v680_v46 = vadd.f32 %v664_v20, %v580_v21  ;;  %1267 = vmatprep.subr.mxu1 %v826_v24  ;;  %1224 = vmatprep.subr.mxu0 %v827_v61 }
 0x19d   : > { %v1313_v32 = vpop.eup %1312  ;;  %1322 = vpow2.f32 %v648_v34  ;;  %1283 = vmatpush3.msra.mxu1 %v826_v24  ;;  %1225 = vmatpush3.msra.mxu0 %v827_v61  ;;  %v564_v20 = vmul.f32 %v1641_v40, %v1624_v27  ;;  %v567_v27 = vmul.f32 %v1641_v40, %v1636_v35  ;;  %v566_v35 = vmul.f32 %v1641_v40, %v1647_v44 }
 0x19e   : > { %v606_v9 = vmul.f32 %v1603_v52, %v1688_v39  ;;  %v650_v53 = vmul.f32 1.442695, %v622_v42  ;;  %692 = vperm.xlu1 %1305, %v674_v43   ;;  %722 = vperm.xlu0 %1304, %v680_v46   ;;  %v659_v62 = vmul.f32 %v1313_v32, %v1449_v4  ;;  %v597_v4 = vmul.f32 %v1603_v52, %v1706_v55 }
 0x19f   : > { %v535_v59 = vpop.xlane.xlu1 %534  ;;  %1226 = vmatprep.subr.mxu0 %v826_v24  ;;  %v582_v45 = vadd.f32 %v1655_v57, %v564_v20  ;;  %v586_v46 = vadd.f32 %v1655_v57, %v568_v26  ;;  %v570_v22 = vmul.f32 %v1641_v40, %v1688_v39  ;;  %v559_v44 = vmul.f32 %v1641_v40, %v1658_v58 }
 0x1a0   : > { %v624_v56 = vadd.f32 %v1606_v54, %v606_v9  ;;  %v1710_v60 = vadd.f32 %v1600_v49, %v535_v59  ;;  %1324 = vpow2.f32 %v650_v53  ;;  %v675_v29 = vadd.f32 %v659_v62, %v575_v51  ;;  %1227 = vmatpush3.msra.mxu0 %v826_v24 }
 0x1a1   : > { %v1315_v0 = vpop.eup %1314  ;;  %1326 = vpow2.f32 %v646_v50  ;;  %v615_v3 = vadd.f32 %v1606_v54, %v597_v4  ;;  %v585_v53 = vadd.f32 %v1655_v57, %v567_v27  ;;  %v560_v24 = vmul.f32 %v1641_v40, %v1677_v10  ;;  %v1776_v10 = vld [vmem:[%s1863_s3 + $0x2] ss:$0 sm:$0xff] }
 0x1a2   : > { %v654_v21 = vmul.f32 1.442695, %v624_v56  ;;  %v607_v49 = vmul.f32 %v1603_v52, %v1710_v60  ;;  %v1317_v25 = vpop.eup %1316  ;;  %v660_v30 = vmul.f32 %v1315_v0, %v1452_v5  ;;  %697 = vperm.xlu1 %1305, %v675_v29   ;;  %v634_v5 = vmul.f32 1.442695, %v614_v19 }
 0x1a3   : > { %v667_v36 = vmul.f32 %v1317_v25, %v1491_v12  ;;  %v1319_v37 = vpop.eup %1318  ;;  %v636_v12 = vmul.f32 1.442695, %v615_v3  ;;  %v588_v56 = vadd.f32 %v1655_v57, %v570_v22  ;;  %v571_v39 = vmul.f32 %v1641_v40, %v1710_v60 }
 0x1a4   : > { %1328 = vpow2.f32 %v654_v21  ;;  %v625_v31 = vadd.f32 %v1606_v54, %v607_v49  ;;  %v676_v34 = vadd.f32 %v660_v30, %v576_v63  ;;  %v666_v42 = vmul.f32 %v1319_v37, %v1484_v11 }
 0x1a5   : > { %1330 = vpow2.f32 %v632_v2  ;;  %v683_v41 = vadd.f32 %v667_v36, %v583_v1  ;;  %v584_v0 = vadd.f32 %v1655_v57, %v566_v35  ;;  %v589_v2 = vadd.f32 %v1655_v57, %v571_v39 }
 0x1a6   : > { %v656_v52 = vmul.f32 1.442695, %v625_v31  ;;  %702 = vperm.xlu1 %1305, %v676_v34   ;;  %v578_v29 = vadd.f32 %v1655_v57, %v560_v24 }
 0x1a8   : > { %1332 = vpow2.f32 %v656_v52 }
 0x1a9   : > { %v1321_v38 = vpop.eup %1320  ;;  %1334 = vpow2.f32 %v634_v5 }
 0x1aa   : > { %v671_v54 = vmul.f32 %v1321_v38, %v1511_v16  ;;  %v1323_v43 = vpop.eup %1322  ;;  %737 = vperm.xlu1 %1305, %v683_v41   ;;  %1336 = vpow2.f32 %v636_v12  ;;  %v682_v16 = vadd.f32 %v666_v42, %v582_v45 }
 0x1ab   : > { %v669_v11 = vmul.f32 %v1323_v43, %v1501_v14 }
 0x1ac   : > { %v687_v23 = vadd.f32 %v671_v54, %v587_v47 }
 0x1ad   : > { %v1325_v9 = vpop.eup %1324 }
 0x1ae   : > { %757 = vperm.xlu0 %1304, %v687_v23   ;;  %v670_v48 = vmul.f32 %v1325_v9, %v1504_v15  ;;  %v1327_v32 = vpop.eup %1326  ;;  %732 = vperm.xlu1 %1305, %v682_v16   ;;  %v685_v15 = vadd.f32 %v669_v11, %v585_v53 }
 0x1af   : > { %v668_v14 = vmul.f32 %v1327_v32, %v1494_v13  ;;  %v577_v13 = vadd.f32 %v1655_v57, %v559_v44 }
 0x1b0   : > { %v686_v59 = vadd.f32 %v670_v48, %v586_v46 }
 0x1b1   : > { %v1329_v50 = vpop.eup %1328  ;;  %v684_v60 = vadd.f32 %v668_v14, %v584_v0 }
 0x1b2   : > { %v672_v61 = vmul.f32 %v1329_v50, %v1514_v17  ;;  %752 = vperm.xlu0 %1304, %v686_v59   ;;  %v1331_v51 = vpop.eup %1330  ;;  %747 = vperm.xlu1 %1305, %v685_v15  }
 0x1b3   : > { %v661_v17 = vmul.f32 %v1331_v51, %v1461_v6 }
 0x1b4   : > { %v688_v63 = vadd.f32 %v672_v61, %v588_v56 }
 0x1b5   : > { %v1333_v62 = vpop.eup %1332  ;;  %v677_v25 = vadd.f32 %v661_v17, %v577_v13 }
 0x1b6   : > { %v673_v19 = vmul.f32 %v1333_v62, %v1521_v18  ;;  %762 = vperm.xlu0 %1304, %v688_v63   ;;  %v1335_v21 = vpop.eup %1334  ;;  %742 = vperm.xlu1 %1305, %v684_v60   ;;  %v561_v18 = vmul.f32 %v1641_v40, %v1706_v55  ;;  %v1782_v40 = vld [vmem:[%s1863_s3 + $0x3] ss:$0 sm:$0xff] }
 0x1b7   : > { %v662_v58 = vmul.f32 %v1335_v21, %v1464_v7  ;;  %v1337_v4 = vpop.eup %1336 }
 0x1b8   : > { %v689_v49 = vadd.f32 %v673_v19, %v589_v2  ;;  %v663_v30 = vmul.f32 %v1337_v4, %v1471_v8  ;;  %v579_v31 = vadd.f32 %v1655_v57, %v561_v18 }
 0x1b9   : > { %v678_v6 = vadd.f32 %v662_v58, %v578_v29 }
 0x1ba   : > { %767 = vperm.xlu0 %1304, %v689_v49   ;;  %707 = vperm.xlu1 %1305, %v677_v25   ;;  %v679_v33 = vadd.f32 %v663_v30, %v579_v31 }
 0x1be   : > { %712 = vperm.xlu1 %1305, %v678_v6  }
 0x1c2   : > { %717 = vperm.xlu1 %1305, %v679_v33  }
 0x215   : > { %v728_v7 = vpop.permute.xlu1 %727 }
 0x216   : > { %v781_v34 = vmul.f32 %v1776_v10, %v728_v7 }
 0x218   : > { %v801_v52 = vadd.f32 %v1782_v40, %v781_v34 }
 0x219   : > { %v693_v55 = vpop.permute.xlu1 %692  ;;  %v723_v8 = vpop.permute.xlu0 %722 }
 0x21a   : > { %v774_v57 = vmul.f32 %v1776_v10, %v693_v55  ;;  %v780_v28 = vmul.f32 %v1776_v10, %v723_v8  ;;  %v817_v1 = vmax.f32 %v801_v52, 0.0  ;;  %v1112_v55 = vld [vmem:[%s1863_s3 + $0x4] ss:$0 sm:$0xff] }
 0x21c   : > { %v794_v5 = vadd.f32 %v1782_v40, %v774_v57  ;;  %v800_v3 = vadd.f32 %v1782_v40, %v780_v28 }
 0x21d   : > { %v698_v37 = vpop.permute.xlu1 %697 }
 0x21e   : > { %v810_v36 = vmax.f32 %v794_v5, 0.0  ;;  %v816_v38 = vmax.f32 %v800_v3, 0.0  ;;  %v775_v20 = vmul.f32 %v1776_v10, %v698_v37 }
 0x220   : > { %1228 = vmatprep.mubr.f32.mxu0 %v810_v36  ;;  %1237 = vmatprep.mubr.f32.mxu1 %v816_v38  ;;  %v795_v47 = vadd.f32 %v1782_v40, %v775_v20 }
 0x221   : > { %1238 = vmatmul.mubr.f32.vlgmr.msra.gmra.mxu1 %v817_v1  ;;  %v703_v26 = vpop.permute.xlu1 %702 }
 0x222   : > { %v811_v54 = vmax.f32 %v795_v47, 0.0  ;;  %v776_v12 = vmul.f32 %v1776_v10, %v703_v26 }
 0x224   : > { %v796_v41 = vadd.f32 %v1782_v40, %v776_v12  ;;  %1229 = vmatmul.mubr.f32.vlgmr.msra.gmra.mxu0 %v811_v54 }
 0x225   : > { %v738_v42 = vpop.permute.xlu1 %737 }
 0x226   : > { %v812_v43 = vmax.f32 %v796_v41, 0.0  ;;  %v783_v45 = vmul.f32 %v1776_v10, %v738_v42 }
 0x228   : > { %1231 = vmatprep.mubr.f32.mxu0 %v812_v43  ;;  %v803_v46 = vadd.f32 %v1782_v40, %v783_v45 }
 0x229   : > { %v758_v23 = vpop.permute.xlu0 %757  ;;  %v733_v27 = vpop.permute.xlu1 %732 }
 0x22a   : > { %v782_v9 = vmul.f32 %v1776_v10, %v733_v27  ;;  %v819_v32 = vmax.f32 %v803_v46, 0.0  ;;  %v787_v39 = vmul.f32 %v1776_v10, %v758_v23 }
 0x22c   : > { %v802_v16 = vadd.f32 %v1782_v40, %v782_v9  ;;  %v807_v2 = vadd.f32 %v1782_v40, %v787_v39 }
 0x22d   : > { %v753_v22 = vpop.permute.xlu0 %752  ;;  %v748_v48 = vpop.permute.xlu1 %747 }
 0x22e   : > { %v818_v11 = vmax.f32 %v802_v16, 0.0  ;;  %v785_v50 = vmul.f32 %v1776_v10, %v748_v48  ;;  %v786_v35 = vmul.f32 %v1776_v10, %v753_v22  ;;  %v823_v58 = vmax.f32 %v807_v2, 0.0 }
 0x230   : > { %1240 = vmatprep.mubr.f32.mxu1 %v818_v11  ;;  %v805_v61 = vadd.f32 %v1782_v40, %v785_v50  ;;  %v806_v15 = vadd.f32 %v1782_v40, %v786_v35 }
 0x231   : > { %v763_v53 = vpop.permute.xlu0 %762  ;;  %v743_v59 = vpop.permute.xlu1 %742  ;;  %1241 = vmatmul.mubr.f32.gmra.mxu1 %v819_v32 }
 0x232   : > { %v784_v56 = vmul.f32 %v1776_v10, %v743_v59  ;;  %v788_v51 = vmul.f32 %v1776_v10, %v763_v53  ;;  %v821_v19 = vmax.f32 %v805_v61, 0.0  ;;  %v822_v17 = vmax.f32 %v806_v15, 0.0 }
 0x234   : > { %v804_v14 = vadd.f32 %v1782_v40, %v784_v56  ;;  %v808_v21 = vadd.f32 %v1782_v40, %v788_v51 }
 0x235   : > { %v768_v63 = vpop.permute.xlu0 %767  ;;  %v708_v62 = vpop.permute.xlu1 %707 }
 0x236   : > { %v820_v0 = vmax.f32 %v804_v14, 0.0  ;;  %v777_v44 = vmul.f32 %v1776_v10, %v708_v62  ;;  %v789_v60 = vmul.f32 %v1776_v10, %v768_v63  ;;  %v824_v29 = vmax.f32 %v808_v21, 0.0 }
 0x238   : > { %v797_v49 = vadd.f32 %v1782_v40, %v777_v44  ;;  %1243 = vmatprep.mubr.f32.mxu1 %v820_v0  ;;  %v809_v4 = vadd.f32 %v1782_v40, %v789_v60 }
 0x239   : > { %v713_v13 = vpop.permute.xlu1 %712  ;;  %1244 = vmatmul.mubr.f32.gmra.mxu1 %v821_v19 }
 0x23a   : > { %v813_v24 = vmax.f32 %v797_v49, 0.0  ;;  %v778_v25 = vmul.f32 %v1776_v10, %v713_v13  ;;  %1246 = vmatprep.mubr.f32.mxu1 %v822_v17  ;;  %v825_v33 = vmax.f32 %v809_v4, 0.0 }
 0x23c   : > { %v798_v18 = vadd.f32 %v1782_v40, %v778_v25  ;;  %1232 = vmatmul.mubr.f32.gmra.mxu0 %v813_v24 }
 0x23d   : > { %v718_v6 = vpop.permute.xlu1 %717  ;;  %1247 = vmatmul.mubr.f32.gmra.mxu1 %v823_v58 }
 0x23e   : > { %v814_v30 = vmax.f32 %v798_v18, 0.0  ;;  %v779_v31 = vmul.f32 %v1776_v10, %v718_v6  ;;  %1249 = vmatprep.mubr.f32.mxu1 %v824_v29 }
 0x240   : > { %v799_v7 = vadd.f32 %v1782_v40, %v779_v31  ;;  %1234 = vmatprep.mubr.f32.mxu0 %v814_v30 }
 0x241   : > { %1250 = vmatmul.mubr.f32.gmra.mxu1 %v825_v33 }
 0x242   : > { %v815_v34 = vmax.f32 %v799_v7, 0.0 }
 0x244   : > { %1235 = vmatmul.mubr.f32.gmra.mxu0 %v815_v34 }
 0x2e1   : > { %v1239_v10 = vpop.f32.mrf.mxu1 }
 0x2e2   : > { %v948_v40 = vadd.f32 %v1239_v10, %v1112_v55 }
 0x2e3   : > { %v942_v8 = vpop.f32.mrf.mxu1 }
 0x2e4   : > { %999 = vst.msk [vmem:[%s1823_s19 + $0x38] sm:$0xff] %vm991_vm2, %v948_v40  ;;  %v943_v57 = vadd.f32 %v1112_v55, %v942_v8  ;;  %v1230_v28 = vpop.f32.mrf.mxu0 }
 0x2e5   : > { %v918_v52 = vadd.f32 %v1230_v28, %v1112_v55 }
 0x2e6   : > { %998 = vst.msk [vmem:[%s1823_s19 + $0x30] sm:$0xff] %vm991_vm2, %v943_v57  ;;  %v912_v5 = vpop.f32.mrf.mxu0 }
 0x2e7   : > { %993 = vst.msk [vmem:[%s1823_s19 + $0x8] sm:$0xff] %vm991_vm2, %v918_v52  ;;  %v913_v3 = vadd.f32 %v1112_v55, %v912_v5 }
 0x2e9   : > { %992 = vst.msk [vmem:[%s1823_s19] sm:$0xff] %vm991_vm2, %v913_v3 }
 0x2f1   : > { %v1242_v36 = vpop.f32.mrf.mxu1 }
 0x2f2   : > { %v958_v37 = vadd.f32 %v1242_v36, %v1112_v55 }
 0x2f3   : > { %v952_v38 = vpop.f32.mrf.mxu1 }
 0x2f4   : > { %1001 = vst.msk [vmem:[%s1823_s19 + $0x48] sm:$0xff] %vm991_vm2, %v958_v37  ;;  %v953_v1 = vadd.f32 %v1112_v55, %v952_v38 }
 0x2f6   : > { %1000 = vst.msk [vmem:[%s1823_s19 + $0x40] sm:$0xff] %vm991_vm2, %v953_v1 }
 0x2f9   : > { %v1245_v20 = vpop.f32.mrf.mxu1 }
 0x2fa   : > { %v968_v47 = vadd.f32 %v1245_v20, %v1112_v55 }
 0x2fb   : > { %v962_v26 = vpop.f32.mrf.mxu1 }
 0x2fc   : > { %1003 = vst.msk [vmem:[%s1823_s19 + $0x58] sm:$0xff] %vm991_vm2, %v968_v47  ;;  %v963_v54 = vadd.f32 %v1112_v55, %v962_v26  ;;  %v1233_v12 = vpop.f32.mrf.mxu0 }
 0x2fd   : > { %v928_v41 = vadd.f32 %v1233_v12, %v1112_v55  ;;  %v1248_v42 = vpop.f32.mrf.mxu1 }
 0x2fe   : > { %1002 = vst.msk [vmem:[%s1823_s19 + $0x50] sm:$0xff] %vm991_vm2, %v963_v54  ;;  %v978_v43 = vadd.f32 %v1248_v42, %v1112_v55  ;;  %v922_v23 = vpop.f32.mrf.mxu0 }
 0x2ff   : > { %995 = vst.msk [vmem:[%s1823_s19 + $0x18] sm:$0xff] %vm991_vm2, %v928_v41  ;;  %v923_v45 = vadd.f32 %v1112_v55, %v922_v23  ;;  %v972_v27 = vpop.f32.mrf.mxu1 }
 0x300   : > { %1005 = vst.msk [vmem:[%s1823_s19 + $0x68] sm:$0xff] %vm991_vm2, %v978_v43  ;;  %v973_v9 = vadd.f32 %v1112_v55, %v972_v27 }
 0x301   : > { %994 = vst.msk [vmem:[%s1823_s19 + $0x10] sm:$0xff] %vm991_vm2, %v923_v45  ;;  %v1251_v46 = vpop.f32.mrf.mxu1 }
 0x302   : > { %1004 = vst.msk [vmem:[%s1823_s19 + $0x60] sm:$0xff] %vm991_vm2, %v973_v9  ;;  %v988_v22 = vadd.f32 %v1251_v46, %v1112_v55 }
 0x303   : > { %v982_v16 = vpop.f32.mrf.mxu1 }
 0x304   : > { %1007 = vst.msk [vmem:[%s1823_s19 + $0x78] sm:$0xff] %vm991_vm2, %v988_v22  ;;  %v983_v48 = vadd.f32 %v1112_v55, %v982_v16  ;;  %v1236_v11 = vpop.f32.mrf.mxu0 }
 0x305   : > { %v938_v32 = vadd.f32 %v1236_v11, %v1112_v55 }
 0x306   : > { %1006 = vst.msk [vmem:[%s1823_s19 + $0x70] sm:$0xff] %vm991_vm2, %v983_v48  ;;  %v932_v50 = vpop.f32.mrf.mxu0 }
 0x307   : > { %997 = vst.msk [vmem:[%s1823_s19 + $0x28] sm:$0xff] %vm991_vm2, %v938_v32  ;;  %v933_v53 = vadd.f32 %v1112_v55, %v932_v50 }
 0x309   : > { %996 = vst.msk [vmem:[%s1823_s19 + $0x20] sm:$0xff] %vm991_vm2, %v933_v53 }
 0x30a PF: > { %s16_s18 = sadd.s32 1, %s1363_s18  }
 0x30b   : > { %p13_p1 = scmp.ge.s32.totalorder %s16_s18, 4  }
 0x30d   :  { %15 = sbr.rel (!%p13_p1) target bundleno = 1 (0x1), region = 75 }
 0x312   :  { %1030 = vsyncpa [#allocation3], 1 }
 0x313   :  { %1032 = vsyncpa [#allocation3 + $0x1], 1 }

</bundles_post_ra>
